<compile_context>
chip_gen: v5e
topology: v5e:2x2
jax: 0.10.0
libtpu: 0.0.40
codegen_flags: <defaults>
</compile_context>

<pallas_src>
import jax
import jax.numpy as jnp
from jax.experimental import pallas as pl
from jax.experimental.pallas import tpu as pltpu


def _round_up(x, m):
    return ((x + m - 1) // m) * m


def _pick_tile(padded, align, cap):
    """Largest multiple of `align` that evenly divides `padded` and is <= cap."""
    cap = max(align, min(cap, padded))
    t = (cap // align) * align
    while t > align:
        if padded % t == 0:
            return t
        t -= align
    return align  # `padded` is a multiple of `align`, so this always divides.


def _linear_kernel(x_ref, w_ref, b_ref, o_ref):
    # x_ref: [tm, tk] bf16 ; w_ref: [tk, tn] bf16 ; b_ref: [1, tn] f32
    # o_ref: [tm, tn] f32 -- block index constant over k, so it stays VMEM
    # resident across the reduction and doubles as the accumulator.
    @pl.when(pl.program_id(2) == 0)
    def _():
        o_ref[...] = jnp.broadcast_to(b_ref[...], o_ref.shape)

    o_ref[...] += jnp.dot(
        x_ref[...], w_ref[...], preferred_element_type=jnp.float32
    )


class PallasLinear:
    """Pallas stand-in for `self.net = nn.Linear(D_in, D_out)` used by
    `Module.forward(X) = self.net(X)`.

    Weight transpose / bf16 cast / K,N padding are done ONCE here, hoisted out
    of the per-call path (the Linear weight is static across forward calls).
    """

    def __init__(self, weight, bias, *, tm_cap=512, tn_cap=512, tk_cap=1024):
        D_out, D_in = weight.shape
        assert bias.shape == (D_out,)
        self.D_in, self.D_out = D_in, D_out
        self.tm_cap = tm_cap

        # Lane-dense padding. K padding MUST be zeros (reduction correctness);
        # N padding columns are sliced away afterwards.
        self.K_pad = _round_up(D_in, 128)
        self.N_pad = _round_up(D_out, 128)
        self.tk = _pick_tile(self.K_pad, 128, tk_cap)
        self.tn = _pick_tile(self.N_pad, 128, tn_cap)

        self.w_p = jnp.pad(
            weight.T.astype(jnp.bfloat16),
            ((0, self.K_pad - D_in), (0, self.N_pad - D_out)),
        )
        self.b_p = jnp.pad(
            bias.astype(jnp.float32), (0, self.N_pad - D_out)
        ).reshape(1, self.N_pad)

    def __call__(self, x):
        B, D_in = x.shape
        assert D_in == self.D_in
        out_dtype = x.dtype

        # bf16 rows pack two-per-sublane -> align M to 16.
        M_pad = _round_up(B, 16)
        tm = _pick_tile(M_pad, 16, self.tm_cap)
        # Keep >= 2 parallel tiles for megacore / 2-TC chips when the whole
        # problem would otherwise collapse to a (1, 1, k) grid.
        if self.N_pad // self.tn == 1 and M_pad // tm == 1 and M_pad >= 32:
            tm = _pick_tile(M_pad, 16, M_pad // 2)

        # One fused pad of the bf16-cast activations. M-padding rows only feed
        # output rows that are sliced away; K padding supplies the required
        # zeros for the reduction.
        x_p = jnp.pad(
            x.astype(jnp.bfloat16), ((0, M_pad - B), (0, self.K_pad - D_in))
        )

        grid = (M_pad // tm, self.N_pad // self.tn, self.K_pad // self.tk)

        # Honest re-streaming byte counts for XLA's scheduler.
        cost = pl.CostEstimate(
            flops=2 * M_pad * self.N_pad * self.K_pad,
            transcendentals=0,
            bytes_accessed=(
                grid[1] * M_pad * self.K_pad * 2         # X re-read per j tile
                + grid[0] * self.K_pad * self.N_pad * 2  # W re-read per i tile
                + grid[0] * grid[1] * self.tn * 4        # bias
                + M_pad * self.N_pad * 4                 # output write
            ),
        )

        out_p = pl.pallas_call(
            _linear_kernel,
            out_shape=jax.ShapeDtypeStruct((M_pad, self.N_pad), jnp.float32),
            grid=grid,
            in_specs=[
                pl.BlockSpec((tm, self.tk), lambda i, j, k: (i, k)),
                pl.BlockSpec((self.tk, self.tn), lambda i, j, k: (k, j)),
                pl.BlockSpec((1, self.tn), lambda i, j, k: (0, j)),
            ],
            out_specs=pl.BlockSpec((tm, self.tn), lambda i, j, k: (i, j)),
            compiler_params=pltpu.CompilerParams(
                dimension_semantics=("parallel", "parallel", "arbitrary"),
            ),
            cost_estimate=cost,
        )(x_p, self.w_p, self.b_p)

        return out_p[:B, : self.D_out].astype(out_dtype)


def module_forward(x, weight, bias):
    """One-shot convenience path: Module.forward(X) = net(X)."""
    return PallasLinear(weight, bias)(x)


# TODO(synk): loss/plot/training_step/validation_step/configure_optimizers are
# training/plotting utilities with no kernel equivalent; only forward is done.


if __name__ == "__main__":
    key = jax.random.PRNGKey(0)
    k_x, k_w, k_b = jax.random.split(key, 3)

    # Small shapes consistent with the module's Linear forward.
    B, D_in, D_out = 8, 32, 16
    x = jax.random.normal(k_x, (B, D_in), dtype=jnp.float32)
    weight = jax.random.normal(k_w, (D_out, D_in), dtype=jnp.float32) * 0.05
    bias = jax.random.normal(k_b, (D_out,), dtype=jnp.float32) * 0.05

    net = PallasLinear(weight, bias)          # weight prep hoisted (once)
    y = jax.block_until_ready(net(x))

    # Reference with identical bf16 input rounding, f32 accumulation.
    xb = x.astype(jnp.bfloat16).astype(jnp.float32)
    wb = weight.astype(jnp.bfloat16).astype(jnp.float32)
    y_ref = xb @ wb.T + bias
    assert y.shape == (B, D_out)
    assert jnp.allclose(y, y_ref, atol=1e-3, rtol=1e-3)

    # Second case exercising the multi-tile (i, j, k) grid + divisor-based
    # tile selection (384x384x384 padded work instead of the old 512^3).
    B2, D_in2, D_out2 = 384, 320, 272
    k_x2, k_w2, k_b2 = jax.random.split(jax.random.PRNGKey(1), 3)
    x2 = jax.random.normal(k_x2, (B2, D_in2), dtype=jnp.float32)
    w2 = jax.random.normal(k_w2, (D_out2, D_in2), dtype=jnp.float32) * 0.05
    b2 = jax.random.normal(k_b2, (D_out2,), dtype=jnp.float32) * 0.05

    net2 = PallasLinear(w2, b2)
    y2 = jax.block_until_ready(net2(x2))
    y2_ref = (
        x2.astype(jnp.bfloat16).astype(jnp.float32)
        @ w2.astype(jnp.bfloat16).astype(jnp.float32).T
        + b2
    )
    assert y2.shape == (B2, D_out2)
    assert jnp.allclose(y2, y2_ref, atol=2e-3, rtol=2e-3)

    print("KERNEL_OK")
</pallas_src>

<mosaic_0001>
module attributes {stable_mosaic.version = 11 : i64} {
  func.func @_linear_kernel(%arg0: i32, %arg1: i32, %arg2: i32, %arg3: memref<16x128xbf16, #tpu.memory_space<vmem>>, %arg4: memref<128x128xbf16, #tpu.memory_space<vmem>>, %arg5: memref<1x128xf32, #tpu.memory_space<vmem>>, %arg6: memref<16x128xf32, #tpu.memory_space<vmem>>) attributes {dimension_semantics = [#tpu.dimension_semantics<parallel>, #tpu.dimension_semantics<parallel>, #tpu.dimension_semantics<arbitrary>], iteration_bounds = array<i64: 1, 1, 1>, scalar_prefetch = 0 : i64, scratch_operands = 0 : i64, tpu.core_type = #tpu.core_type<tc>, window_params = [{transform_indices = @transform_0, window_bounds = array<i64: 16, 128>}, {transform_indices = @transform_1, window_bounds = array<i64: 128, 128>}, {transform_indices = @transform_2, window_bounds = array<i64: 1, 128>}, {transform_indices = @transform_3, window_bounds = array<i64: 16, 128>}]} {
    %c0_i32 = arith.constant 0 : i32
    %0 = arith.cmpi eq, %arg2, %c0_i32 : i32
    %1 = arith.extui %0 : i1 to i32
    %c0_i32_0 = arith.constant 0 : i32
    %2 = arith.cmpi ne, %1, %c0_i32_0 : i32
    scf.if %2 {
      %c0_8 = arith.constant 0 : index
      %c0_9 = arith.constant 0 : index
      %9 = vector.load %arg5[%c0_8, %c0_9] : memref<1x128xf32, #tpu.memory_space<vmem>>, vector<1x128xf32>
      %10 = vector.shape_cast %9 : vector<1x128xf32> to vector<1x128xf32>
      %11 = vector.broadcast %10 : vector<1x128xf32> to vector<16x128xf32>
      %c0_10 = arith.constant 0 : index
      %c0_11 = arith.constant 0 : index
      %12 = vector.load %arg6[%c0_10, %c0_11] : memref<16x128xf32, #tpu.memory_space<vmem>>, vector<16x128xf32>
      tpu.vector_store %arg6[%c0_10, %c0_11], %11 {strides = array<i32>} : memref<16x128xf32, #tpu.memory_space<vmem>>, vector<16x128xf32>,
    } else {
    }
    %c0 = arith.constant 0 : index
    %c0_1 = arith.constant 0 : index
    %3 = vector.load %arg6[%c0, %c0_1] : memref<16x128xf32, #tpu.memory_space<vmem>>, vector<16x128xf32>
    %c0_2 = arith.constant 0 : index
    %c0_3 = arith.constant 0 : index
    %4 = vector.load %arg3[%c0_2, %c0_3] : memref<16x128xbf16, #tpu.memory_space<vmem>>, vector<16x128xbf16>
    %c0_4 = arith.constant 0 : index
    %c0_5 = arith.constant 0 : index
    %5 = vector.load %arg4[%c0_4, %c0_5] : memref<128x128xbf16, #tpu.memory_space<vmem>>, vector<128x128xbf16>
    %cst = arith.constant dense<0.000000e+00> : vector<16x128xf32>
    %6 = tpu.matmul %4, %5, %cst {dimension_numbers = #tpu.dot_dimension_numbers<[1], [0], [0], [1], [0, 0, 1, 1], [], []>} : vector<16x128xbf16>, vector<128x128xbf16>, vector<16x128xf32> -> vector<16x128xf32>
    %7 = arith.addf %3, %6 : vector<16x128xf32>
    %c0_6 = arith.constant 0 : index
    %c0_7 = arith.constant 0 : index
    %8 = vector.load %arg6[%c0_6, %c0_7] : memref<16x128xf32, #tpu.memory_space<vmem>>, vector<16x128xf32>
    tpu.vector_store %arg6[%c0_6, %c0_7], %7 {strides = array<i32>} : memref<16x128xf32, #tpu.memory_space<vmem>>, vector<16x128xf32>,
    return
  }
  func.func @transform_0(%arg0: i32, %arg1: i32, %arg2: i32) -> (i32, i32) {
    %c0_i32 = arith.constant 0 : i32
    return %arg0, %arg2 : i32, i32
  }
  func.func @transform_1(%arg0: i32, %arg1: i32, %arg2: i32) -> (i32, i32) {
    %c0_i32 = arith.constant 0 : i32
    return %arg2, %arg1 : i32, i32
  }
  func.func @transform_2(%arg0: i32, %arg1: i32, %arg2: i32) -> (i32, i32) {
    %c0_i32 = arith.constant 0 : i32
    %c0_i32_0 = arith.constant 0 : i32
    return %c0_i32, %arg1 : i32, i32
  }
  func.func @transform_3(%arg0: i32, %arg1: i32, %arg2: i32) -> (i32, i32) {
    %c0_i32 = arith.constant 0 : i32
    return %arg0, %arg1 : i32, i32
  }
}

</mosaic_0001>

<bundles_post_ra>
// kernel: tpu_custom_call.1
= control target key start
LH: loop header
LB: loop body
LE: loop exit
PB: predicated region body
PF: predicated region fallthrough
CT: control target
= control target key end

     0   :  { %8 = vsyncpa [#allocation3], 0  ;;  %s339_s0 = inlined_call_operand.hbm [shape: bf16[16,128], index: 0, kind: input, shape index: {}]   ;;  %s340_s1 = inlined_call_operand.hbm [shape: bf16[128,128], index: 1, kind: input, shape index: {}]   ;;  %s341_s2 = inlined_call_operand.vmem [shape: f32[1,128], index: 2, kind: input, shape index: {}]   ;;  %s342_s3 = inlined_call_operand.hbm [shape: f32[16,128], index: 3, kind: output, shape index: {}]  }
   0x1   :  { %9 = vsyncpa [#allocation6], 0 }
   0x2   :  { %10 = vsyncpa [#allocation4], 0  ;;  %s15_s14 = sshll.u32 %s339_s0, 4  ;;  %s300_s15 = smov [#allocation2]   ;;  %s16_s14 = int_to_ptr.hbm [resolvable:$true] %s15_s14 }
   0x3   :  { %s17_s16 = sshll.u32 %s300_s15, 4  ;;  %s28_s19 = sshll.u32 %s340_s1, 4  ;;  %s18_s16 = int_to_ptr.vmem [resolvable:$true] %s17_s16  ;;  %s29_s19 = int_to_ptr.hbm [resolvable:$true] %s28_s19 }
   0x4   :  { %s301_s20 = smov 64   ;;  %s302_s21 = smov 4  }
   0x5   :  { %23 = dma.hbm_to_vmem [thread:$0]  %s16_s14, 128, %s18_s16, [#allocation3], %s301_s20, %s301_s20, %s302_s21  }
   0x6   :  { %s303_s22 = smov [#allocation5]  }
   0x7   :  { %s30_s23 = sshll.u32 %s303_s22, 4  ;;  %s31_s23 = int_to_ptr.vmem [resolvable:$true] %s30_s23 }
   0x8   :  { %36 = dma.hbm_to_vmem [thread:$0]  %s29_s19, 1024, %s31_s23, [#allocation6], %s301_s20, %s301_s20, %s302_s21  }
   0x9   :  { %294 = dma.done.wait [#allocation3], 128  }
   0xa   :  { %295 = vsyncadd [#allocation3], 4294967168 }
   0xb   :  { %296 = dma.done.wait [#allocation6], 1024  }
   0xc   :  { %297 = vsyncadd [#allocation6], 4294966272  ;;  %v213_v0 = vld [vmem:[#allocation5 + $0x38] sm:$0xff]  ;;  %v212_v1 = vld [vmem:[#allocation5 + $0x30] sm:$0xff]  ;;  %s304_s24 = smov [#allocation7]   ;;  %s155_s28 = sshll.u32 %s342_s3, 4  ;;  %s156_s28 = int_to_ptr.hbm [resolvable:$true] %s155_s28 }
   0xd   :  { %131 = vmatpush.bf16.msra.mxu0 %v213_v0  ;;  %v211_v2 = vld [vmem:[#allocation5 + $0x28] sm:$0xff]  ;;  %v210_v3 = vld [vmem:[#allocation5 + $0x20] sm:$0xff]  ;;  %v209_v4 = vld [vmem:[#allocation5 + $0x18] sm:$0xff]  ;;  %s153_s25 = sshll.u32 %s304_s24, 4  ;;  %s305_s29 = smov 128   ;;  %s154_s25 = int_to_ptr.vmem [resolvable:$true] %s153_s25 }
   0xe   :  { %v208_v5 = vld [vmem:[#allocation5 + $0x10] sm:$0xff]  ;;  %v207_v6 = vld [vmem:[#allocation5 + $0x8] sm:$0xff]  ;;  %v206_v7 = vld [vmem:[#allocation5] sm:$0xff]  ;;  %s306_s30 = smov 8  }
   0xf   :  { %v205_v8 = vld [vmem:[#allocation2] sm:$0xff] }
  0x10   :  { %v221_v9 = vld [vmem:[%s341_s2] ss:$0 sm:$0xff] }
  0x11   :  { %132 = vmatpush.bf16.msra.mxu0 %v212_v1 }
  0x15   :  { %133 = vmatpush.bf16.msra.mxu0 %v211_v2 }
  0x19   :  { %134 = vmatpush.bf16.msra.mxu0 %v210_v3 }
  0x1d   :  { %135 = vmatpush.bf16.msra.mxu0 %v209_v4 }
  0x21   :  { %136 = vmatpush.bf16.msra.mxu0 %v208_v5 }
  0x25   :  { %137 = vmatpush.bf16.msra.mxu0 %v207_v6 }
  0x29   :  { %138 = vmatpush.bf16.msra.mxu0 %v206_v7 }
  0x2c   :  { %139 = vmatmul.bf16.vlgmr.msra.gmra.mxu0 %v205_v8 }
  0xa9   :  { %v140_v10 = vpop.f32.mrf.mxu0 }
  0xaa   :  { %v145_v11 = vadd.f32 %v221_v9, %v140_v10 }
  0xac   :  { %147 = vst [vmem:[#allocation7] sm:$0xff] %v145_v11 }
  0xb1   :  { %v142_v12 = vpop.f32.mrf.mxu0 }
  0xb2   :  { %v146_v13 = vadd.f32 %v221_v9, %v142_v12 }
  0xb4   :  { %148 = vst [vmem:[#allocation7 + $0x8] sm:$0xff] %v146_v13 }
  0xb5   :  { %161 = dma.vmem_to_hbm [thread:$0]  %s154_s25, 256, %s156_s28, [#allocation4], %s305_s29, %s305_s29, %s306_s30  }
  0xb6   :  { %298 = dma.done.wait [#allocation4], 256  }
  0xb7   :  { %299 = vsyncadd [#allocation4], 4294967040 }
  0xb8   :  { %166 = vsyncpa [#allocation3], 1 }
  0xb9   :  { %167 = vsyncpa [#allocation6], 1 }
  0xba   :  { %168 = vsyncpa [#allocation4], 1 }

</bundles_post_ra>
